<compile_context>
chip_gen: v7x
topology: tpu7x:2x2x1
jax: 0.10.0
libtpu: 0.0.40
codegen_flags: <defaults>
</compile_context>

<pallas_src>
import functools

import jax
import jax.numpy as jnp
from jax.experimental import pallas as pl
from jax.experimental.pallas import tpu as pltpu

LEAKY_SLOPE = 0.01
BN_EPS = 1e-5
LANE = 128


def _round_up(x, m):
    return (x + m - 1) // m * m


def _has_two_tensorcores():
    """Best-effort detection of 2-TensorCore-per-chip parts (v7x)."""
    try:
        kind = jax.devices()[0].device_kind.lower()
    except Exception:
        return False
    return "v7" in kind


# ----------------------------- kernels ------------------------------------ #

def _decoder_kernel_branch(r_ref, w1_ref, b1_ref, wh_ref, bh_ref, out_ref):
    """One branch per grid step (v7x: grid=(2,) 'parallel' -> one branch per TC)."""
    # fc: Linear with eval-mode BatchNorm folded into w1/b1 (done once on host),
    # then LeakyReLU (Dropout = identity in eval mode).
    h = jnp.dot(r_ref[...], w1_ref[...], preferred_element_type=jnp.float32) + b1_ref[...]
    h = jnp.maximum(h, LEAKY_SLOPE * h)
    # Fused mu / logvar heads: one MXU matmul into a lane-dense (B, P) slab.
    out_ref[...] = (jnp.dot(h.astype(jnp.bfloat16), wh_ref[...],
                            preferred_element_type=jnp.float32)
                    + bh_ref[...]).astype(out_ref.dtype)


def _decoder_kernel_merged(r_ref, w1_ref, b1_ref, wh_ref, bh_ref, out_ref):
    """Both branches in one invocation (v5e/v6e: single TC, avoid a serial 2-step grid)."""
    for i in range(2):  # static unroll over the two branches
        h = jnp.dot(r_ref[i], w1_ref[i], preferred_element_type=jnp.float32) + b1_ref[i]
        h = jnp.maximum(h, LEAKY_SLOPE * h)
        out_ref[i] = (jnp.dot(h.astype(jnp.bfloat16), wh_ref[i],
                              preferred_element_type=jnp.float32)
                      + bh_ref[i]).astype(out_ref.dtype)


# --------------------- one-time parameter preparation ---------------------- #

def prepare_decoder_params(params):
    """Fold BN into fc, fuse+pad the heads, cast weights to bf16, stack branches.

    Call ONCE (outside the per-step path); the returned arrays are reused by
    every decoder_normal_forward call.
    """
    def fold(p):
        # Fold eval-mode BatchNorm1d (running stats + affine) into the fc Linear.
        scale = p["gamma"] / jnp.sqrt(p["var"] + BN_EPS)          # (1, H)
        w1 = (p["w1"] * scale).astype(jnp.bfloat16)               # (H, H)
        b1 = (p["b1"] - p["mean"]) * scale + p["beta"]            # (1, H), f32
        # Fuse mu / logvar heads; give each head its own 128-lane slot so the
        # post-kernel slices are lane-aligned.
        O = p["wmu"].shape[1]
        OP = _round_up(O, LANE)
        wh = jnp.concatenate([jnp.pad(p["wmu"], ((0, 0), (0, OP - O))),
                              jnp.pad(p["wlv"], ((0, 0), (0, OP - O)))],
                             axis=1).astype(jnp.bfloat16)         # (H, 2*OP)
        bh = jnp.concatenate([jnp.pad(p["bmu"], ((0, 0), (0, OP - O))),
                              jnp.pad(p["blv"], ((0, 0), (0, OP - O)))],
                             axis=1)                              # (1, 2*OP), f32
        return w1, b1, wh, bh

    f0 = fold(params["zero"])
    f1 = fold(params["one"])
    w1, b1, wh, bh = (jnp.stack([a, b]) for a, b in zip(f0, f1))
    return {"w1": w1, "b1": b1, "wh": wh, "bh": bh}


# ------------------------------ forward ------------------------------------ #

@functools.partial(jax.jit, static_argnames=("output_dim", "use_branch_grid"))
def decoder_normal_forward(prepared, r0, r1, *, output_dim, use_branch_grid=False):
    w1, b1, wh, bh = prepared["w1"], prepared["b1"], prepared["wh"], prepared["bh"]
    B, H = r0.shape
    P = wh.shape[-1]
    OP = P // 2                      # lane-aligned start of the logvar slot

    # Only the tiny activations are touched per call; weights are pre-laid-out.
    r = jnp.stack([r0, r1]).astype(jnp.bfloat16)        # (2, B, H)

    if use_branch_grid:
        # v7x: branch axis as a parallel grid dim -> one branch per TensorCore.
        out = pl.pallas_call(
            _decoder_kernel_branch,
            out_shape=jax.ShapeDtypeStruct((2, B, P), jnp.float32),
            grid=(2,),
            in_specs=[
                pl.BlockSpec((None, B, H), lambda i: (i, 0, 0)),   # r (branch i)
                pl.BlockSpec((None, H, H), lambda i: (i, 0, 0)),   # folded fc weight
                pl.BlockSpec((None, 1, H), lambda i: (i, 0, 0)),   # folded fc bias
                pl.BlockSpec((None, H, P), lambda i: (i, 0, 0)),   # fused head weight
                pl.BlockSpec((None, 1, P), lambda i: (i, 0, 0)),   # fused head bias
            ],
            out_specs=pl.BlockSpec((None, B, P), lambda i: (i, 0, 0)),
            compiler_params=pltpu.CompilerParams(
                dimension_semantics=("parallel",)),
        )(r, w1, b1, wh, bh)
    else:
        # v5e / v6e (single TC): both branches in one kernel step.
        out = pl.pallas_call(
            _decoder_kernel_merged,
            out_shape=jax.ShapeDtypeStruct((2, B, P), jnp.float32),
            grid=(1,),
            in_specs=[
                pl.BlockSpec((2, B, H), lambda i: (0, 0, 0)),
                pl.BlockSpec((2, H, H), lambda i: (0, 0, 0)),
                pl.BlockSpec((2, 1, H), lambda i: (0, 0, 0)),
                pl.BlockSpec((2, H, P), lambda i: (0, 0, 0)),
                pl.BlockSpec((2, 1, P), lambda i: (0, 0, 0)),
            ],
            out_specs=pl.BlockSpec((2, B, P), lambda i: (0, 0, 0)),
        )(r, w1, b1, wh, bh)

    # Lane-aligned slices: mu at lanes [0, O), logvar at lanes [OP, OP+O).
    mu = out[:, :, :output_dim]
    logvar = out[:, :, OP:OP + output_dim]
    return {"mu_zero": mu[0], "logvar_zero": logvar[0],
            "mu_one": mu[1], "logvar_one": logvar[1]}


# ------------------------------ params init -------------------------------- #

def init_decoder_params(key, hidden_dim, output_dim):
    """Deterministic parameter init (stand-in for model_init)."""
    ks = jax.random.split(key, 20)
    scale = 0.1

    def lin(kw, kb, fan_in, fan_out):
        w = scale * jax.random.normal(kw, (fan_in, fan_out), jnp.float32)  # (in, out)
        b = scale * jax.random.normal(kb, (1, fan_out), jnp.float32)
        return w, b

    def branch(keys):
        w1, b1 = lin(keys[0], keys[1], hidden_dim, hidden_dim)
        gamma = jnp.ones((1, hidden_dim), jnp.float32) \
            + scale * jax.random.normal(keys[2], (1, hidden_dim), jnp.float32)
        beta = scale * jax.random.normal(keys[3], (1, hidden_dim), jnp.float32)
        # BN buffers (not parameters): default init
        mean = jnp.zeros((1, hidden_dim), jnp.float32)
        var = jnp.ones((1, hidden_dim), jnp.float32)
        wmu, bmu = lin(keys[4], keys[5], hidden_dim, output_dim)
        wlv, blv = lin(keys[6], keys[7], hidden_dim, output_dim)
        return dict(w1=w1, b1=b1, gamma=gamma, beta=beta, mean=mean, var=var,
                    wmu=wmu, bmu=bmu, wlv=wlv, blv=blv)

    return {"zero": branch(ks[:8]), "one": branch(ks[8:16])}


def _reference_branch(r, p):
    h = r @ p["w1"] + p["b1"]
    h = (h - p["mean"]) / jnp.sqrt(p["var"] + BN_EPS) * p["gamma"] + p["beta"]
    h = jnp.where(h > 0, h, LEAKY_SLOPE * h)
    return h @ p["wlv"] + p["blv"], h @ p["wmu"] + p["bmu"]


if __name__ == "__main__":
    B, H, O = 8, 32, 16
    key = jax.random.PRNGKey(0)
    k_params, k_r0, k_r1 = jax.random.split(key, 3)

    params = init_decoder_params(k_params, H, O)
    r0 = jax.random.normal(k_r0, (B, H), jnp.float32)
    r1 = jax.random.normal(k_r1, (B, H), jnp.float32)

    # One-time preprocessing (cached outside the per-call path).
    prepared = prepare_decoder_params(params)
    prepared = jax.block_until_ready(prepared)

    use_grid = _has_two_tensorcores()
    out = decoder_normal_forward(prepared, r0, r1, output_dim=O,
                                 use_branch_grid=use_grid)
    jax.block_until_ready(out)

    # Correctness check against a pure-JAX f32 reference (original, unfolded params).
    # Tolerance loosened for bf16 MXU operands (f32 accumulation).
    lv0_ref, mu0_ref = _reference_branch(r0, params["zero"])
    lv1_ref, mu1_ref = _reference_branch(r1, params["one"])
    assert jnp.allclose(out["mu_zero"], mu0_ref, atol=3e-2, rtol=3e-2)
    assert jnp.allclose(out["logvar_zero"], lv0_ref, atol=3e-2, rtol=3e-2)
    assert jnp.allclose(out["mu_one"], mu1_ref, atol=3e-2, rtol=3e-2)
    assert jnp.allclose(out["logvar_one"], lv1_ref, atol=3e-2, rtol=3e-2)

    print("KERNEL_OK")
</pallas_src>

<mosaic_0001>
module attributes {stable_mosaic.version = 11 : i64} {
  func.func @_decoder_kernel_merged(%arg0: i32, %arg1: memref<2x8x32xbf16, #tpu.memory_space<vmem>>, %arg2: memref<2x32x32xbf16, #tpu.memory_space<vmem>>, %arg3: memref<2x1x32xf32, #tpu.memory_space<vmem>>, %arg4: memref<2x32x256xbf16, #tpu.memory_space<vmem>>, %arg5: memref<2x1x256xf32, #tpu.memory_space<vmem>>, %arg6: memref<2x8x256xf32, #tpu.memory_space<vmem>>) attributes {dimension_semantics = [#tpu.dimension_semantics<arbitrary>], iteration_bounds = array<i64: 1>, scalar_prefetch = 0 : i64, scratch_operands = 0 : i64, tpu.core_type = #tpu.core_type<tc>, window_params = [{pipeline_mode = #tpu.pipeline_mode<synchronous>, transform_indices = @transform_0, window_bounds = array<i64: 2, 8, 32>}, {pipeline_mode = #tpu.pipeline_mode<synchronous>, transform_indices = @transform_1, window_bounds = array<i64: 2, 32, 32>}, {pipeline_mode = #tpu.pipeline_mode<synchronous>, transform_indices = @transform_2, window_bounds = array<i64: 2, 1, 32>}, {pipeline_mode = #tpu.pipeline_mode<synchronous>, transform_indices = @transform_3, window_bounds = array<i64: 2, 32, 256>}, {pipeline_mode = #tpu.pipeline_mode<synchronous>, transform_indices = @transform_4, window_bounds = array<i64: 2, 1, 256>}, {pipeline_mode = #tpu.pipeline_mode<synchronous>, transform_indices = @transform_5, window_bounds = array<i64: 2, 8, 256>}]} {
    %c0 = arith.constant 0 : index
    %c0_0 = arith.constant 0 : index
    %c0_1 = arith.constant 0 : index
    %0 = vector.load %arg1[%c0, %c0_0, %c0_1] : memref<2x8x32xbf16, #tpu.memory_space<vmem>>, vector<1x8x32xbf16>
    %1 = vector.shape_cast %0 : vector<1x8x32xbf16> to vector<8x32xbf16>
    %c0_2 = arith.constant 0 : index
    %c0_3 = arith.constant 0 : index
    %c0_4 = arith.constant 0 : index
    %2 = vector.load %arg2[%c0_2, %c0_3, %c0_4] : memref<2x32x32xbf16, #tpu.memory_space<vmem>>, vector<1x32x32xbf16>
    %3 = vector.shape_cast %2 : vector<1x32x32xbf16> to vector<32x32xbf16>
    %cst = arith.constant dense<0.000000e+00> : vector<8x32xf32>
    %4 = tpu.matmul %1, %3, %cst {dimension_numbers = #tpu.dot_dimension_numbers<[1], [0], [0], [1], [0, 0, 1, 1], [], []>} : vector<8x32xbf16>, vector<32x32xbf16>, vector<8x32xf32> -> vector<8x32xf32>
    %c0_5 = arith.constant 0 : index
    %c0_6 = arith.constant 0 : index
    %c0_7 = arith.constant 0 : index
    %5 = vector.load %arg3[%c0_5, %c0_6, %c0_7] : memref<2x1x32xf32, #tpu.memory_space<vmem>>, vector<1x1x32xf32>
    %6 = vector.shape_cast %5 : vector<1x1x32xf32> to vector<1x32xf32>
    %7 = vector.broadcast %6 : vector<1x32xf32> to vector<8x32xf32>
    %8 = arith.addf %4, %7 : vector<8x32xf32>
    %cst_8 = arith.constant 0.00999999977 : f32
    %9 = vector.broadcast %cst_8 : f32 to vector<8x32xf32>
    %10 = arith.mulf %9, %8 : vector<8x32xf32>
    %11 = arith.maximumf %8, %10 : vector<8x32xf32>
    %12 = arith.truncf %11 : vector<8x32xf32> to vector<8x32xbf16>
    %c0_9 = arith.constant 0 : index
    %c0_10 = arith.constant 0 : index
    %c0_11 = arith.constant 0 : index
    %13 = vector.load %arg4[%c0_9, %c0_10, %c0_11] : memref<2x32x256xbf16, #tpu.memory_space<vmem>>, vector<1x32x256xbf16>
    %14 = vector.shape_cast %13 : vector<1x32x256xbf16> to vector<32x256xbf16>
    %cst_12 = arith.constant dense<0.000000e+00> : vector<8x256xf32>
    %15 = tpu.matmul %12, %14, %cst_12 {dimension_numbers = #tpu.dot_dimension_numbers<[1], [0], [0], [1], [0, 0, 1, 1], [], []>} : vector<8x32xbf16>, vector<32x256xbf16>, vector<8x256xf32> -> vector<8x256xf32>
    %c0_13 = arith.constant 0 : index
    %c0_14 = arith.constant 0 : index
    %c0_15 = arith.constant 0 : index
    %16 = vector.load %arg5[%c0_13, %c0_14, %c0_15] : memref<2x1x256xf32, #tpu.memory_space<vmem>>, vector<1x1x256xf32>
    %17 = vector.shape_cast %16 : vector<1x1x256xf32> to vector<1x256xf32>
    %18 = vector.broadcast %17 : vector<1x256xf32> to vector<8x256xf32>
    %19 = arith.addf %15, %18 : vector<8x256xf32>
    %c0_16 = arith.constant 0 : index
    %c0_17 = arith.constant 0 : index
    %c0_18 = arith.constant 0 : index
    %20 = vector.load %arg6[%c0_16, %c0_17, %c0_18] : memref<2x8x256xf32, #tpu.memory_space<vmem>>, vector<1x8x256xf32>
    %21 = vector.shape_cast %20 : vector<1x8x256xf32> to vector<8x256xf32>
    %22 = vector.shape_cast %19 : vector<8x256xf32> to vector<1x8x256xf32>
    tpu.vector_store %arg6[%c0_16, %c0_17, %c0_18], %22 {strides = array<i32>} : memref<2x8x256xf32, #tpu.memory_space<vmem>>, vector<1x8x256xf32>,
    %c1 = arith.constant 1 : index
    %c0_19 = arith.constant 0 : index
    %c0_20 = arith.constant 0 : index
    %23 = vector.load %arg1[%c1, %c0_19, %c0_20] : memref<2x8x32xbf16, #tpu.memory_space<vmem>>, vector<1x8x32xbf16>
    %24 = vector.shape_cast %23 : vector<1x8x32xbf16> to vector<8x32xbf16>
    %c1_21 = arith.constant 1 : index
    %c0_22 = arith.constant 0 : index
    %c0_23 = arith.constant 0 : index
    %25 = vector.load %arg2[%c1_21, %c0_22, %c0_23] : memref<2x32x32xbf16, #tpu.memory_space<vmem>>, vector<1x32x32xbf16>
    %26 = vector.shape_cast %25 : vector<1x32x32xbf16> to vector<32x32xbf16>
    %cst_24 = arith.constant dense<0.000000e+00> : vector<8x32xf32>
    %27 = tpu.matmul %24, %26, %cst_24 {dimension_numbers = #tpu.dot_dimension_numbers<[1], [0], [0], [1], [0, 0, 1, 1], [], []>} : vector<8x32xbf16>, vector<32x32xbf16>, vector<8x32xf32> -> vector<8x32xf32>
    %c1_25 = arith.constant 1 : index
    %c0_26 = arith.constant 0 : index
    %c0_27 = arith.constant 0 : index
    %28 = vector.load %arg3[%c1_25, %c0_26, %c0_27] : memref<2x1x32xf32, #tpu.memory_space<vmem>>, vector<1x1x32xf32>
    %29 = vector.shape_cast %28 : vector<1x1x32xf32> to vector<1x32xf32>
    %30 = vector.broadcast %29 : vector<1x32xf32> to vector<8x32xf32>
    %31 = arith.addf %27, %30 : vector<8x32xf32>
    %cst_28 = arith.constant 0.00999999977 : f32
    %32 = vector.broadcast %cst_28 : f32 to vector<8x32xf32>
    %33 = arith.mulf %32, %31 : vector<8x32xf32>
    %34 = arith.maximumf %31, %33 : vector<8x32xf32>
    %35 = arith.truncf %34 : vector<8x32xf32> to vector<8x32xbf16>
    %c1_29 = arith.constant 1 : index
    %c0_30 = arith.constant 0 : index
    %c0_31 = arith.constant 0 : index
    %36 = vector.load %arg4[%c1_29, %c0_30, %c0_31] : memref<2x32x256xbf16, #tpu.memory_space<vmem>>, vector<1x32x256xbf16>
    %37 = vector.shape_cast %36 : vector<1x32x256xbf16> to vector<32x256xbf16>
    %cst_32 = arith.constant dense<0.000000e+00> : vector<8x256xf32>
    %38 = tpu.matmul %35, %37, %cst_32 {dimension_numbers = #tpu.dot_dimension_numbers<[1], [0], [0], [1], [0, 0, 1, 1], [], []>} : vector<8x32xbf16>, vector<32x256xbf16>, vector<8x256xf32> -> vector<8x256xf32>
    %c1_33 = arith.constant 1 : index
    %c0_34 = arith.constant 0 : index
    %c0_35 = arith.constant 0 : index
    %39 = vector.load %arg5[%c1_33, %c0_34, %c0_35] : memref<2x1x256xf32, #tpu.memory_space<vmem>>, vector<1x1x256xf32>
    %40 = vector.shape_cast %39 : vector<1x1x256xf32> to vector<1x256xf32>
    %41 = vector.broadcast %40 : vector<1x256xf32> to vector<8x256xf32>
    %42 = arith.addf %38, %41 : vector<8x256xf32>
    %c1_36 = arith.constant 1 : index
    %c0_37 = arith.constant 0 : index
    %c0_38 = arith.constant 0 : index
    %43 = vector.load %arg6[%c1_36, %c0_37, %c0_38] : memref<2x8x256xf32, #tpu.memory_space<vmem>>, vector<1x8x256xf32>
    %44 = vector.shape_cast %43 : vector<1x8x256xf32> to vector<8x256xf32>
    %45 = vector.shape_cast %42 : vector<8x256xf32> to vector<1x8x256xf32>
    tpu.vector_store %arg6[%c1_36, %c0_37, %c0_38], %45 {strides = array<i32>} : memref<2x8x256xf32, #tpu.memory_space<vmem>>, vector<1x8x256xf32>,
    return
  }
  func.func @transform_0(%arg0: i32) -> (i32, i32, i32) {
    %c0_i32 = arith.constant 0 : i32
    %c0_i32_0 = arith.constant 0 : i32
    %c0_i32_1 = arith.constant 0 : i32
    %c0_i32_2 = arith.constant 0 : i32
    return %c0_i32, %c0_i32_0, %c0_i32_1 : i32, i32, i32
  }
  func.func @transform_1(%arg0: i32) -> (i32, i32, i32) {
    %c0_i32 = arith.constant 0 : i32
    %c0_i32_0 = arith.constant 0 : i32
    %c0_i32_1 = arith.constant 0 : i32
    %c0_i32_2 = arith.constant 0 : i32
    return %c0_i32, %c0_i32_0, %c0_i32_1 : i32, i32, i32
  }
  func.func @transform_2(%arg0: i32) -> (i32, i32, i32) {
    %c0_i32 = arith.constant 0 : i32
    %c0_i32_0 = arith.constant 0 : i32
    %c0_i32_1 = arith.constant 0 : i32
    %c0_i32_2 = arith.constant 0 : i32
    return %c0_i32, %c0_i32_0, %c0_i32_1 : i32, i32, i32
  }
  func.func @transform_3(%arg0: i32) -> (i32, i32, i32) {
    %c0_i32 = arith.constant 0 : i32
    %c0_i32_0 = arith.constant 0 : i32
    %c0_i32_1 = arith.constant 0 : i32
    %c0_i32_2 = arith.constant 0 : i32
    return %c0_i32, %c0_i32_0, %c0_i32_1 : i32, i32, i32
  }
  func.func @transform_4(%arg0: i32) -> (i32, i32, i32) {
    %c0_i32 = arith.constant 0 : i32
    %c0_i32_0 = arith.constant 0 : i32
    %c0_i32_1 = arith.constant 0 : i32
    %c0_i32_2 = arith.constant 0 : i32
    return %c0_i32, %c0_i32_0, %c0_i32_1 : i32, i32, i32
  }
  func.func @transform_5(%arg0: i32) -> (i32, i32, i32) {
    %c0_i32 = arith.constant 0 : i32
    %c0_i32_0 = arith.constant 0 : i32
    %c0_i32_1 = arith.constant 0 : i32
    %c0_i32_2 = arith.constant 0 : i32
    return %c0_i32, %c0_i32_0, %c0_i32_1 : i32, i32, i32
  }
}

</mosaic_0001>

<bundles_post_ra>
// kernel: decoder_normal_forward.1
= control target key start
LH: loop header
LB: loop body
LE: loop exit
PB: predicated region body
PF: predicated region fallthrough
CT: control target
= control target key end

     0   :  { %10 = vsyncpa [#allocation3], 0  ;;  %s446_s18 = smov [#allocation2]   ;;  %s540_s0 = inlined_call_operand.vmem [shape: bf16[2,8,32], index: 0, kind: input, shape index: {}]   ;;  %s541_s1 = inlined_call_operand.vmem [shape: bf16[2,32,32], index: 1, kind: input, shape index: {}]   ;;  %s542_s2 = inlined_call_operand.vmem [shape: f32[2,1,32], index: 2, kind: input, shape index: {}]   ;;  %s543_s3 = inlined_call_operand.hbm [shape: bf16[2,32,256], index: 3, kind: input, shape index: {}]   ;;  %s544_s4 = inlined_call_operand.vmem [shape: f32[2,1,256], index: 4, kind: input, shape index: {}]   ;;  %s545_s5 = inlined_call_operand.vmem [shape: f32[2,8,256], index: 5, kind: output, shape index: {}]  }
   0x1   :  { %s22_s19 = sshll.u32 %s446_s18, 4  ;;  %s422_s22 = scalar_lea.hbm %s543_s3, 1024  ;;  %s23_s19 = int_to_ptr.vmem [resolvable:$true] %s22_s19 }
   0x2   :  { %p423_p0 = scmp.ne.s32.totalorder %s543_s3, %s422_s22  ;;  %p426_p1 = scmp.lt.u32.totalorder %s422_s22, %s543_s3 }
   0x4   :  { %p428_p2 = pnand %p426_p1, %p423_p0 }
   0x6   :  { %431 = shalt.err (!%p428_p2)
}
   0x7   :  { %s432_s27 = scalar_lea.vmem %s23_s19, 1024  ;;  %p437_p4 = scmp.lt.s32.totalorder %s23_s19, %s23_s19 }
   0x8   :  { %p433_p3 = scmp.ne.s32.totalorder %s23_s19, %s432_s27  ;;  %p438_p5 = scmp.lt.s32.totalorder %s432_s27, %s432_s27 }
   0xa   :  { %p439_p6 = por %p438_p5, %p437_p4 }
   0xc   :  { %p440_p7 = pnand %p439_p6, %p433_p3 }
   0xe   :  { %443 = shalt.err (!%p440_p7)
}
   0xf   :  { %s447_s28 = smov 128   ;;  %s448_s29 = smov 8  }
  0x10   :  { %28 = dma.hbm_to_vmem [thread:$0]  %s543_s3, 1024, %s23_s19, [#allocation3], %s447_s28, %s447_s28, %s448_s29  }
  0x11   :  { %444 = dma.done.wait [#allocation3], 1024  }
  0x12   :  { %445 = vsyncadd [#allocation3], 4294966272  ;;  %v449_v0 = vmov 0.0   ;;  %vm450_vm0 = vmmov 0   ;;  %v406_v1 = vld [vmem:[%s541_s1] sm:$0xff]   ;;  %v407_v2 = vld [vmem:[%s541_s1 + $0x8] sm:$0xff]   ;;  %v112_v34 = vlaneseq }
  0x13   :  { %384 = vmatprep.subr.bf16.mxu0 %v449_v0  ;;  %388 = vmatprep.mubr.msk.bf16.mxu0 %vm450_vm0, %v449_v0  ;;  %v35_v3 = vld [vmem:[%s540_s0] sm:$0xf]  ;;  %v408_v4 = vld [vmem:[%s541_s1 + $0x10] sm:$0xff]   ;;  %vm59_vm1 = vcmask 261120   ;;  %v409_v5 = vld [vmem:[%s541_s1 + $0x18] sm:$0xff]   ;;  %v451_v12 = vmov 0  }
  0x14   :  { %385 = vmatpush3.bf16.msra.mxu0 %v406_v1  ;;  %v360_v6 = vld [vmem:[%s540_s0 + $0x4] sm:$0xf]  ;;  %v412_v8 = vld [vmem:[#allocation2] ss:$8 sps:$4 sm:$0xff]   ;;  %v413_v9 = vld [vmem:[#allocation2 + $0x14] ss:$8 sps:$4 sm:$0xff]   ;;  %177 = vmatprep.mubr.bf16.mxu1 %v451_v12 }
  0x15   :  { %386 = vmatprep.subr.bf16.mxu0 %v449_v0  ;;  %v410_v7 = vld [vmem:[#allocation2 + $0x4] ss:$8 sps:$4 sm:$0xff]   ;;  %v415_v10 = vld [vmem:[#allocation2 + $0x10] ss:$8 sps:$4 sm:$0xff]   ;;  %v351_v13 = vld [vmem:[%s542_s2] ss:$0 sm:$0xff] }
  0x16   :  { %145 = vmatprep.subr.bf16.mxu1 %v410_v7  ;;  %v418_v11 = vld [vmem:[#allocation2 + $0x24] ss:$8 sps:$4 sm:$0xff]   ;;  %v366_v21 = vld [vmem:[%s542_s2 + $0x1] ss:$0 sm:$0xff]  ;;  %v421_v24 = vld [vmem:[#allocation2 + $0x34] ss:$8 sps:$4 sm:$0xff]  }
  0x17   :  { %146 = vmatpush1.bf16.msra.mxu1 %v412_v8  ;;  %v416_v22 = vld [vmem:[#allocation2 + $0x20] ss:$8 sps:$4 sm:$0xff]   ;;  %v419_v29 = vld [vmem:[#allocation2 + $0x30] ss:$8 sps:$4 sm:$0xff]   ;;  %v113_v35 = vshrl.u32 %v112_v34, 7 }
  0x18   :  { %387 = vmatpush3.bf16.msra.mxu0 %v407_v2  ;;  %147 = vmatprep.subr.bf16.mxu1 %v413_v9  ;;  %v110_v37 = vld [vmem:[%s544_s4] sm:$0x3]  ;;  %v370_v46 = vld [vmem:[%s544_s4 + $0x2] sm:$0x3] }
  0x19   :  { %392 = vmatprep.subr.bf16.mxu0 %v449_v0  ;;  %v114_v36 = vsub.s32 0, %v113_v35  ;;  %v118_v38 = vsub.s32 1, %v113_v35 }
  0x1b   :  { %389 = vmatmul.mubr.msk.bf16.vlgmr.msra.gmra.mrb[0].mxu0 %vm59_vm1, %v35_v3  ;;  %148 = vmatpush1.bf16.msra.mxu1 %v415_v10  ;;  %v115_v39 = vrot.slane %v110_v37, %v114_v36  ;;  %v119_v40 = vrot.slane %v110_v37, %v118_v38  ;;  %v272_v48 = vrot.slane %v370_v46, %v114_v36 }
  0x1c   :  { %393 = vmatpush3.bf16.msra.mxu0 %v408_v4  ;;  %396 = vmatprep.mubr.msk.bf16.mxu0 %vm450_vm0, %v449_v0  ;;  %v276_v49 = vrot.slane %v370_v46, %v118_v38 }
  0x1d   :  { %394 = vmatprep.subr.bf16.mxu0 %v449_v0  ;;  %302 = vmatprep.subr.bf16.mxu1 %v418_v11 }
  0x20   :  { %395 = vmatpush3.bf16.msra.mxu0 %v409_v5 }
  0x23   :  { %397 = vmatmul.mubr.msk.bf16.vlgmr.msra.gmra.mrb[4].mxu0 %vm59_vm1, %v360_v6 }
  0xee   :  { %v97_v14 = vpop.f32.mrb[0].mxu0 }
  0xef   :  { %v98_v15 = vadd.f32 %v351_v13, %v97_v14  ;;  %v390_v16 = vpop.f32.mrb[1].mxu0 }
  0xf0   :  { %v100_v17 = vpop.f32.mrb[2].mxu0 }
  0xf1   :  { %v103_v18 = vmul.f32 0.01, %v98_v15  ;;  %v391_v19 = vpop.f32.mrb[3].mxu0 }
  0xf3   :  { %v104_v20 = vmax.f32 %v98_v15, %v103_v18 }
  0xf5   :  { %v105_v23 = vpack.c.bf16 %v104_v20, %v104_v20 }
  0xf6   :  { %v252_v25 = vpop.f32.mrb[4].mxu0 }
  0xf7   :  { %v253_v26 = vadd.f32 %v366_v21, %v252_v25  ;;  %359 = vmatmul.mubr.msk.bf16.vlgmr.msra.gmra.mrb[0].mxu1 %vm59_vm1, %v105_v23  ;;  %v398_v27 = vpop.f32.mrb[5].mxu0 }
  0xf8   :  { %v255_v28 = vpop.f32.mrb[6].mxu0  ;;  %303 = vmatpush1.bf16.msra.mxu1 %v416_v22  ;;  %334 = vmatprep.mubr.bf16.mxu1 %v451_v12 }
  0xf9   :  { %v258_v30 = vmul.f32 0.01, %v253_v26  ;;  %v399_v31 = vpop.f32.mrb[7].mxu0  ;;  %304 = vmatprep.subr.bf16.mxu1 %v421_v24 }
  0xfb   :  { %v259_v32 = vmax.f32 %v253_v26, %v258_v30 }
  0xfc   :  { %305 = vmatpush1.bf16.msra.mxu1 %v419_v29 }
  0xfd   :  { %v260_v33 = vpack.c.bf16 %v259_v32, %v259_v32 }
  0xff   :  { %375 = vmatmul.mubr.msk.bf16.vlgmr.msra.gmra.mrb[4].mxu1 %vm59_vm1, %v260_v33 }
 0x1ca   :  { %v179_v41 = vpop.f32.mrb[0].mxu1 }
 0x1cb   :  { %v180_v42 = vadd.f32 %v179_v41, %v115_v39  ;;  %v181_v43 = vpop.f32.mrb[1].mxu1 }
 0x1cc   :  { %v182_v44 = vadd.f32 %v181_v43, %v119_v40  ;;  %v183_v45 = vpop.f32.mrb[2].mxu1 }
 0x1cd   :  { %186 = vst [vmem:[%s545_s5] sm:$0xff] %v180_v42  ;;  %v184_v47 = vpop.f32.mrb[3].mxu1 }
 0x1ce   :  { %187 = vst [vmem:[%s545_s5 + $0x8] sm:$0xff] %v182_v44 }
 0x1d2   :  { %v336_v50 = vpop.f32.mrb[4].mxu1 }
 0x1d3   :  { %v337_v51 = vadd.f32 %v336_v50, %v272_v48  ;;  %v338_v52 = vpop.f32.mrb[5].mxu1 }
 0x1d4   :  { %v339_v53 = vadd.f32 %v338_v52, %v276_v49  ;;  %v340_v54 = vpop.f32.mrb[6].mxu1 }
 0x1d5   :  { %376 = vst [vmem:[%s545_s5 + $0x10] sm:$0xff] %v337_v51  ;;  %v341_v55 = vpop.f32.mrb[7].mxu1 }
 0x1d6   :  { %377 = vst [vmem:[%s545_s5 + $0x18] sm:$0xff] %v339_v53 }
 0x1d7   :  { %350 = vsyncpa [#allocation3], 1 }

</bundles_post_ra>
